<compile_context>
chip_gen: v7x
topology: tpu7x:2x2x1
jax: 0.10.0
libtpu: 0.0.40
codegen_flags: <defaults>
</compile_context>

<pallas_src>
import jax
import jax.numpy as jnp
from jax.experimental import pallas as pl
from jax.experimental.pallas import tpu as pltpu


LANE = 128      # lane width: feature dims padded to a multiple of this
SUBLANE = 8     # f32 sublane count: batch tiles padded to a multiple of this


def _round_up(x: int, m: int) -> int:
    return (x + m - 1) // m * m


# ---------------------------------------------------------------------------
# Kernel: one batch tile of concat([obs, rtg]) -> MLP -> action
# ---------------------------------------------------------------------------
def rcsl_mlp_kernel(obs_ref, rtg_ref, w1_ref, b1_ref, w2_ref, b2_ref,
                    w3_ref, b3_ref, out_ref, x_ref):
    tile_b, in_pad = x_ref.shape
    obs_dim = obs_ref.shape[-1]
    in_dim = obs_dim + 1
    act_dim = out_ref.shape[-1]
    mxu_dtype = w1_ref.dtype            # bf16 (production) or f32 (exact)

    # ---- assemble concat([obs, rtg]) zero-padded to in_pad lanes in VMEM ---
    # Pad lanes are (re-)zeroed unconditionally each tile: negligible VPU/vst
    # work in an HBM-bound kernel, and it keeps the kernel correct even when
    # the batch grid axis is sharded across TensorCores (no reliance on
    # pl.program_id(0) == 0 executing on every core).
    if in_pad > in_dim:                                        # static check
        x_ref[:, pl.ds(in_dim, in_pad - in_dim)] = jnp.zeros(
            (tile_b, in_pad - in_dim), x_ref.dtype)
    x_ref[:, pl.ds(0, obs_dim)] = obs_ref[...]
    x_ref[:, pl.ds(obs_dim, 1)] = rtg_ref[...]

    # ---- layer 1: Linear + ReLU (f32 MXU accumulation, f32 VPU epilogue) ---
    h1 = jnp.dot(x_ref[...], w1_ref[...], preferred_element_type=jnp.float32)
    h1 = jnp.maximum(h1 + b1_ref[...], 0.0)

    # ---- layer 2: Linear + ReLU -------------------------------------------
    h2 = jnp.dot(h1.astype(mxu_dtype), w2_ref[...],
                 preferred_element_type=jnp.float32)
    h2 = jnp.maximum(h2 + b2_ref[...], 0.0)

    # ---- output layer: full-width MXU matmul, narrow (act_dim) store -------
    out = jnp.dot(h2.astype(mxu_dtype), w3_ref[...],
                  preferred_element_type=jnp.float32)
    out = out + b3_ref[...]
    out_ref[...] = out[:, :act_dim].astype(out_ref.dtype)


# ---------------------------------------------------------------------------
# Wrapper
# ---------------------------------------------------------------------------
def rcsl_forward(obs, rtg, params, *, tile_b=1024):
    """obs: (B, obs_dim), rtg: (B,) or (B, 1) -> action (B, act_dim) f32."""
    obs = jnp.asarray(obs, jnp.float32)
    rtg = jnp.asarray(rtg, jnp.float32)
    if rtg.ndim == 1:
        rtg = rtg[:, None]

    w1, b1 = params["w1"], params["b1"]
    w2, b2 = params["w2"], params["b2"]
    w3, b3 = params["w3"], params["b3"]
    act_dim = params["act_dim"]
    in_pad, h_pad = w1.shape
    a_pad = w3.shape[1]
    obs_dim = obs.shape[1]
    assert obs_dim + 1 <= in_pad

    stream_dtype = w1.dtype          # bf16 in production, f32 for exact tests
    B = obs.shape[0]

    # Batch tiling: multiple of 8 sublanes; pad the tail up to one tile.
    tile_b = max(SUBLANE, min(int(tile_b), _round_up(B, SUBLANE)))
    b_pad = _round_up(B, tile_b)
    n_tiles = b_pad // tile_b

    # Stream activations in the MXU input dtype (halves DMA bytes for bf16).
    # NOTE: this rounds rtg to bf16 exactly like the previous in-kernel cast
    # did; use f32 weights if exact return-to-go conditioning is required.
    obs_s = obs.astype(stream_dtype)
    rtg_s = rtg.astype(stream_dtype)
    if b_pad != B:
        obs_s = jnp.pad(obs_s, ((0, b_pad - B), (0, 0)))
        rtg_s = jnp.pad(rtg_s, ((0, b_pad - B), (0, 0)))

    # Deepen streamed-input pipelining only when the grid can exploit it.
    if n_tiles >= 3:
        stream_kw = dict(pipeline_mode=pl.Buffered(3))
        n_buf = 3
    else:
        stream_kw = {}
        n_buf = 2

    # VMEM budget: resident (double-buffered) weights + streamed blocks +
    # assembly scratch + f32 activations, with margin; capped well below
    # v7x's 64 MiB physical VMEM.
    w_isz = jnp.dtype(stream_dtype).itemsize
    working = (
        2 * ((w1.size + w2.size + w3.size) * w_isz
             + (b1.size + b2.size + b3.size) * 4)
        + n_buf * tile_b * (obs_dim + 1) * w_isz        # streamed obs + rtg
        + 2 * tile_b * act_dim * 4                      # streamed output
        + tile_b * in_pad * w_isz                       # x assembly scratch
        + tile_b * (2 * h_pad + a_pad) * 4)             # f32 activations
    vmem_limit = int(min(max(2 * working + (2 << 20), 8 << 20), 48 << 20))

    def resident(shape):
        return pl.BlockSpec(shape, lambda i: (0, 0))    # stays in VMEM

    out = pl.pallas_call(
        rcsl_mlp_kernel,
        out_shape=jax.ShapeDtypeStruct((b_pad, act_dim), jnp.float32),
        grid=(n_tiles,),
        in_specs=[
            pl.BlockSpec((tile_b, obs_dim), lambda i: (i, 0), **stream_kw),
            pl.BlockSpec((tile_b, 1), lambda i: (i, 0), **stream_kw),
            resident(w1.shape), resident(b1.shape),
            resident(w2.shape), resident(b2.shape),
            resident(w3.shape), resident(b3.shape),
        ],
        out_specs=pl.BlockSpec((tile_b, act_dim), lambda i: (i, 0)),
        scratch_shapes=[pltpu.VMEM((tile_b, in_pad), stream_dtype)],
        compiler_params=pltpu.CompilerParams(
            # Batch tiles are fully independent (megacore-shardable).
            # TODO(synk): evaluate pltpu.CORE_PARALLEL on this axis for
            # guaranteed 2-TensorCore sharding on v7x.
            dimension_semantics=("parallel",),
            vmem_limit_bytes=vmem_limit,
        ),
    )(obs_s, rtg_s, w1, b1, w2, b2, w3, b3)

    return out[:B]


# ---------------------------------------------------------------------------
# Params (nn.Linear-style init, padded to MXU-friendly shapes at init time)
# ---------------------------------------------------------------------------
def init_params(key, obs_dim, hidden_dim, act_dim, weight_dtype=jnp.bfloat16):
    in_dim = obs_dim + 1                        # +1: rtg folded as a feature
    in_pad = _round_up(in_dim, LANE)
    # Fill the 256-wide MXU N dimension on v6e/v7x for large backbones.
    h_pad = _round_up(hidden_dim, 256 if hidden_dim >= 256 else LANE)
    a_pad = _round_up(act_dim, LANE)

    ks = jax.random.split(key, 6)

    def lin(kw, kb, fan_in, fan_out, pad_in, pad_out):
        lim = 1.0 / jnp.sqrt(jnp.float32(fan_in))
        w = jax.random.uniform(kw, (fan_in, fan_out), jnp.float32, -lim, lim)
        b = jax.random.uniform(kb, (1, fan_out), jnp.float32, -lim, lim)
        w = jnp.pad(w, ((0, pad_in - fan_in), (0, pad_out - fan_out)))
        b = jnp.pad(b, ((0, 0), (0, pad_out - fan_out)))
        return w, b

    w1, b1 = lin(ks[0], ks[1], in_dim, hidden_dim, in_pad, h_pad)
    w2, b2 = lin(ks[2], ks[3], hidden_dim, hidden_dim, h_pad, h_pad)
    w3, b3 = lin(ks[4], ks[5], hidden_dim, act_dim, h_pad, a_pad)

    return dict(
        w1=w1.astype(weight_dtype), b1=b1,      # biases stay f32 (VPU path)
        w2=w2.astype(weight_dtype), b2=b2,
        w3=w3.astype(weight_dtype), b3=b3,
        obs_dim=obs_dim, act_dim=act_dim, hidden_dim=hidden_dim,
    )


def reference_forward(obs, rtg, params):
    """Pure-JAX reference matching the PyTorch module (uses stored weights)."""
    obs = jnp.asarray(obs, jnp.float32)
    rtg = jnp.asarray(rtg, jnp.float32)
    if rtg.ndim == 1:
        rtg = rtg[:, None]
    obs_dim, act_dim, hidden = (params["obs_dim"], params["act_dim"],
                                params["hidden_dim"])
    in_dim = obs_dim + 1
    w1 = params["w1"][:in_dim, :hidden].astype(jnp.float32)
    b1 = params["b1"][:, :hidden]
    w2 = params["w2"][:hidden, :hidden].astype(jnp.float32)
    b2 = params["b2"][:, :hidden]
    w3 = params["w3"][:hidden, :act_dim].astype(jnp.float32)
    b3 = params["b3"][:, :act_dim]
    x = jnp.concatenate([obs, rtg], axis=-1)
    h1 = jnp.maximum(x @ w1 + b1, 0.0)
    h2 = jnp.maximum(h1 @ w2 + b2, 0.0)
    return h2 @ w3 + b3


if __name__ == "__main__":
    OBS_DIM, HIDDEN, ACT_DIM = 16, 32, 8
    key = jax.random.PRNGKey(0)
    k_obs, k_rtg, k_param = jax.random.split(key, 3)

    # --- small single-tile batch, f32 weights: bit-faithful check ----------
    B = 8
    obs = jax.random.normal(k_obs, (B, OBS_DIM), jnp.float32)
    rtg = jax.random.normal(k_rtg, (B,), jnp.float32)        # (batch,) form
    params_f32 = init_params(k_param, OBS_DIM, HIDDEN, ACT_DIM,
                             weight_dtype=jnp.float32)
    act = jax.block_until_ready(rcsl_forward(obs, rtg, params_f32))
    ref = reference_forward(obs, rtg, params_f32)
    assert act.shape == (B, ACT_DIM)
    assert jnp.allclose(act, ref, atol=1e-5, rtol=1e-5)

    # --- multi-tile batch with ragged tail: exercises the grid pipeline,
    #     per-tile scratch re-zero, tail padding and Buffered(3) ------------
    B2 = 200
    obs2 = jax.random.normal(k_obs, (B2, OBS_DIM), jnp.float32)
    rtg2 = jax.random.normal(k_rtg, (B2, 1), jnp.float32)    # (batch,1) form
    act2 = jax.block_until_ready(rcsl_forward(obs2, rtg2, params_f32,
                                              tile_b=64))
    ref2 = reference_forward(obs2, rtg2, params_f32)
    assert act2.shape == (B2, ACT_DIM)
    assert jnp.allclose(act2, ref2, atol=1e-5, rtol=1e-5)

    # --- bf16 weights + bf16 activation stream, f32 accumulation -----------
    params_bf16 = init_params(k_param, OBS_DIM, HIDDEN, ACT_DIM,
                              weight_dtype=jnp.bfloat16)
    act3 = jax.block_until_ready(rcsl_forward(obs2, rtg2, params_bf16,
                                              tile_b=64))
    ref3 = reference_forward(obs2, rtg2, params_bf16)
    assert act3.shape == (B2, ACT_DIM)
    assert jnp.allclose(act3, ref3, atol=5e-2, rtol=5e-2)

    print("KERNEL_OK")
</pallas_src>

<mosaic_0001>
module attributes {stable_mosaic.version = 11 : i64} {
  func.func @rcsl_mlp_kernel(%arg0: i32, %arg1: memref<8x16xf32, #tpu.memory_space<vmem>>, %arg2: memref<8x1xf32, #tpu.memory_space<vmem>>, %arg3: memref<128x128xf32, #tpu.memory_space<vmem>>, %arg4: memref<1x128xf32, #tpu.memory_space<vmem>>, %arg5: memref<128x128xf32, #tpu.memory_space<vmem>>, %arg6: memref<1x128xf32, #tpu.memory_space<vmem>>, %arg7: memref<128x128xf32, #tpu.memory_space<vmem>>, %arg8: memref<1x128xf32, #tpu.memory_space<vmem>>, %arg9: memref<8x8xf32, #tpu.memory_space<vmem>>, %arg10: memref<8x128xf32, #tpu.memory_space<vmem>>) attributes {dimension_semantics = [#tpu.dimension_semantics<parallel>], iteration_bounds = array<i64: 1>, scalar_prefetch = 0 : i64, scratch_operands = 1 : i64, tpu.core_type = #tpu.core_type<tc>, window_params = [{transform_indices = @transform_0, window_bounds = array<i64: 8, 16>}, {transform_indices = @transform_1, window_bounds = array<i64: 8, 1>}, {pipeline_mode = #tpu.pipeline_mode<synchronous>, transform_indices = @transform_2, window_bounds = array<i64: 128, 128>}, {pipeline_mode = #tpu.pipeline_mode<synchronous>, transform_indices = @transform_3, window_bounds = array<i64: 1, 128>}, {pipeline_mode = #tpu.pipeline_mode<synchronous>, transform_indices = @transform_4, window_bounds = array<i64: 128, 128>}, {pipeline_mode = #tpu.pipeline_mode<synchronous>, transform_indices = @transform_5, window_bounds = array<i64: 1, 128>}, {pipeline_mode = #tpu.pipeline_mode<synchronous>, transform_indices = @transform_6, window_bounds = array<i64: 128, 128>}, {pipeline_mode = #tpu.pipeline_mode<synchronous>, transform_indices = @transform_7, window_bounds = array<i64: 1, 128>}, {transform_indices = @transform_8, window_bounds = array<i64: 8, 8>}]} {
    %cst = arith.constant 0.000000e+00 : f32
    %0 = vector.broadcast %cst : f32 to vector<8x111xf32>
    %c0 = arith.constant 0 : index
    %c17 = arith.constant 17 : index
    %1 = vector.load %arg10[%c0, %c17] : memref<8x128xf32, #tpu.memory_space<vmem>>, vector<8x111xf32>
    tpu.vector_store %arg10[%c0, %c17], %0 {strides = array<i32>} : memref<8x128xf32, #tpu.memory_space<vmem>>, vector<8x111xf32>,
    %c0_0 = arith.constant 0 : index
    %c0_1 = arith.constant 0 : index
    %2 = vector.load %arg1[%c0_0, %c0_1] : memref<8x16xf32, #tpu.memory_space<vmem>>, vector<8x16xf32>
    %c0_2 = arith.constant 0 : index
    %c0_3 = arith.constant 0 : index
    %3 = vector.load %arg10[%c0_2, %c0_3] : memref<8x128xf32, #tpu.memory_space<vmem>>, vector<8x16xf32>
    tpu.vector_store %arg10[%c0_2, %c0_3], %2 {strides = array<i32>} : memref<8x128xf32, #tpu.memory_space<vmem>>, vector<8x16xf32>,
    %c0_4 = arith.constant 0 : index
    %c0_5 = arith.constant 0 : index
    %4 = vector.load %arg2[%c0_4, %c0_5] : memref<8x1xf32, #tpu.memory_space<vmem>>, vector<8x1xf32>
    %c0_6 = arith.constant 0 : index
    %c16 = arith.constant 16 : index
    %5 = vector.load %arg10[%c0_6, %c16] : memref<8x128xf32, #tpu.memory_space<vmem>>, vector<8x1xf32>
    tpu.vector_store %arg10[%c0_6, %c16], %4 {strides = array<i32>} : memref<8x128xf32, #tpu.memory_space<vmem>>, vector<8x1xf32>,
    %c0_7 = arith.constant 0 : index
    %c0_8 = arith.constant 0 : index
    %6 = vector.load %arg10[%c0_7, %c0_8] : memref<8x128xf32, #tpu.memory_space<vmem>>, vector<8x128xf32>
    %c0_9 = arith.constant 0 : index
    %c0_10 = arith.constant 0 : index
    %7 = vector.load %arg3[%c0_9, %c0_10] : memref<128x128xf32, #tpu.memory_space<vmem>>, vector<128x128xf32>
    %cst_11 = arith.constant dense<0.000000e+00> : vector<8x128xf32>
    %8 = tpu.matmul %6, %7, %cst_11 {dimension_numbers = #tpu.dot_dimension_numbers<[1], [0], [0], [1], [0, 0, 1, 1], [], []>} : vector<8x128xf32>, vector<128x128xf32>, vector<8x128xf32> -> vector<8x128xf32>
    %c0_12 = arith.constant 0 : index
    %c0_13 = arith.constant 0 : index
    %9 = vector.load %arg4[%c0_12, %c0_13] : memref<1x128xf32, #tpu.memory_space<vmem>>, vector<1x128xf32>
    %10 = vector.broadcast %9 : vector<1x128xf32> to vector<8x128xf32>
    %11 = arith.addf %8, %10 : vector<8x128xf32>
    %cst_14 = arith.constant 0.000000e+00 : f32
    %12 = vector.broadcast %cst_14 : f32 to vector<8x128xf32>
    %13 = arith.maximumf %11, %12 : vector<8x128xf32>
    %c0_15 = arith.constant 0 : index
    %c0_16 = arith.constant 0 : index
    %14 = vector.load %arg5[%c0_15, %c0_16] : memref<128x128xf32, #tpu.memory_space<vmem>>, vector<128x128xf32>
    %cst_17 = arith.constant dense<0.000000e+00> : vector<8x128xf32>
    %15 = tpu.matmul %13, %14, %cst_17 {dimension_numbers = #tpu.dot_dimension_numbers<[1], [0], [0], [1], [0, 0, 1, 1], [], []>} : vector<8x128xf32>, vector<128x128xf32>, vector<8x128xf32> -> vector<8x128xf32>
    %c0_18 = arith.constant 0 : index
    %c0_19 = arith.constant 0 : index
    %16 = vector.load %arg6[%c0_18, %c0_19] : memref<1x128xf32, #tpu.memory_space<vmem>>, vector<1x128xf32>
    %17 = vector.broadcast %16 : vector<1x128xf32> to vector<8x128xf32>
    %18 = arith.addf %15, %17 : vector<8x128xf32>
    %cst_20 = arith.constant 0.000000e+00 : f32
    %19 = vector.broadcast %cst_20 : f32 to vector<8x128xf32>
    %20 = arith.maximumf %18, %19 : vector<8x128xf32>
    %c0_21 = arith.constant 0 : index
    %c0_22 = arith.constant 0 : index
    %21 = vector.load %arg7[%c0_21, %c0_22] : memref<128x128xf32, #tpu.memory_space<vmem>>, vector<128x128xf32>
    %cst_23 = arith.constant dense<0.000000e+00> : vector<8x128xf32>
    %22 = tpu.matmul %20, %21, %cst_23 {dimension_numbers = #tpu.dot_dimension_numbers<[1], [0], [0], [1], [0, 0, 1, 1], [], []>} : vector<8x128xf32>, vector<128x128xf32>, vector<8x128xf32> -> vector<8x128xf32>
    %c0_24 = arith.constant 0 : index
    %c0_25 = arith.constant 0 : index
    %23 = vector.load %arg8[%c0_24, %c0_25] : memref<1x128xf32, #tpu.memory_space<vmem>>, vector<1x128xf32>
    %24 = vector.broadcast %23 : vector<1x128xf32> to vector<8x128xf32>
    %25 = arith.addf %22, %24 : vector<8x128xf32>
    %26 = vector.extract_strided_slice %25 {offsets = [0, 0], sizes = [8, 8], strides = [1, 1]} : vector<8x128xf32> to vector<8x8xf32>
    %c0_26 = arith.constant 0 : index
    %c0_27 = arith.constant 0 : index
    %27 = vector.load %arg9[%c0_26, %c0_27] : memref<8x8xf32, #tpu.memory_space<vmem>>, vector<8x8xf32>
    tpu.vector_store %arg9[%c0_26, %c0_27], %26 {strides = array<i32>} : memref<8x8xf32, #tpu.memory_space<vmem>>, vector<8x8xf32>,
    return
  }
  func.func @transform_0(%arg0: i32) -> (i32, i32) {
    %c0_i32 = arith.constant 0 : i32
    %c0_i32_0 = arith.constant 0 : i32
    return %arg0, %c0_i32 : i32, i32
  }
  func.func @transform_1(%arg0: i32) -> (i32, i32) {
    %c0_i32 = arith.constant 0 : i32
    %c0_i32_0 = arith.constant 0 : i32
    return %arg0, %c0_i32 : i32, i32
  }
  func.func @transform_2(%arg0: i32) -> (i32, i32) {
    %c0_i32 = arith.constant 0 : i32
    %c0_i32_0 = arith.constant 0 : i32
    %c0_i32_1 = arith.constant 0 : i32
    return %c0_i32, %c0_i32_0 : i32, i32
  }
  func.func @transform_3(%arg0: i32) -> (i32, i32) {
    %c0_i32 = arith.constant 0 : i32
    %c0_i32_0 = arith.constant 0 : i32
    %c0_i32_1 = arith.constant 0 : i32
    return %c0_i32, %c0_i32_0 : i32, i32
  }
  func.func @transform_4(%arg0: i32) -> (i32, i32) {
    %c0_i32 = arith.constant 0 : i32
    %c0_i32_0 = arith.constant 0 : i32
    %c0_i32_1 = arith.constant 0 : i32
    return %c0_i32, %c0_i32_0 : i32, i32
  }
  func.func @transform_5(%arg0: i32) -> (i32, i32) {
    %c0_i32 = arith.constant 0 : i32
    %c0_i32_0 = arith.constant 0 : i32
    %c0_i32_1 = arith.constant 0 : i32
    return %c0_i32, %c0_i32_0 : i32, i32
  }
  func.func @transform_6(%arg0: i32) -> (i32, i32) {
    %c0_i32 = arith.constant 0 : i32
    %c0_i32_0 = arith.constant 0 : i32
    %c0_i32_1 = arith.constant 0 : i32
    return %c0_i32, %c0_i32_0 : i32, i32
  }
  func.func @transform_7(%arg0: i32) -> (i32, i32) {
    %c0_i32 = arith.constant 0 : i32
    %c0_i32_0 = arith.constant 0 : i32
    %c0_i32_1 = arith.constant 0 : i32
    return %c0_i32, %c0_i32_0 : i32, i32
  }
  func.func @transform_8(%arg0: i32) -> (i32, i32) {
    %c0_i32 = arith.constant 0 : i32
    %c0_i32_0 = arith.constant 0 : i32
    return %arg0, %c0_i32 : i32, i32
  }
}

</mosaic_0001>

<bundles_post_ra>
// kernel: tpu_custom_call.1
= control target key start
LH: loop header
LB: loop body
LE: loop exit
PB: predicated region body
PF: predicated region fallthrough
CT: control target
= control target key end

     0   :  { %13 = vsyncpa [#allocation4], 0  ;;  %s883_s0 = inlined_call_operand.vmem [shape: f32[8,16], index: 0, kind: input, shape index: {}]   ;;  %s884_s1 = inlined_call_operand.vmem [shape: f32[8,1], index: 1, kind: input, shape index: {}]   ;;  %s885_s2 = inlined_call_operand.hbm [shape: f32[128,128], index: 2, kind: input, shape index: {}]   ;;  %s886_s3 = inlined_call_operand.vmem [shape: f32[1,128], index: 3, kind: input, shape index: {}]   ;;  %s887_s4 = inlined_call_operand.hbm [shape: f32[128,128], index: 4, kind: input, shape index: {}]   ;;  %s888_s5 = inlined_call_operand.vmem [shape: f32[1,128], index: 5, kind: input, shape index: {}]   ;;  %s889_s6 = inlined_call_operand.hbm [shape: f32[128,128], index: 6, kind: input, shape index: {}]   ;;  %s890_s7 = inlined_call_operand.vmem [shape: f32[1,128], index: 7, kind: input, shape index: {}]   ;;  %s891_s8 = inlined_call_operand.hbm [shape: f32[8,8], index: 8, kind: output, shape index: {}]  }
   0x1   :  { %14 = vsyncpa [#allocation7], 0 }
   0x2   :  { %15 = vsyncpa [#allocation5], 0  ;;  %s718_s27 = smov [#allocation6]   ;;  %s719_s29 = smov [#allocation3]  }
   0x3   :  { %s39_s28 = sshll.u32 %s718_s27, 4  ;;  %s25_s30 = sshll.u32 %s719_s29, 4  ;;  %s40_s28 = int_to_ptr.vmem [resolvable:$true] %s39_s28  ;;  %s773_s30 = int_to_ptr.vmem [resolvable:$true] %s25_s30 }
   0x4   :  { %s624_s11 = scalar_lea.hbm %s887_s4, 2048 }
   0x5   :  { %p625_p0 = scmp.ne.s32.totalorder %s887_s4, %s624_s11  ;;  %p628_p1 = scmp.lt.u32.totalorder %s624_s11, %s887_s4 }
   0x7   :  { %p630_p2 = pnand %p628_p1, %p625_p0 }
   0x9   :  { %633 = shalt.err (!%p630_p2)
}
   0xa   :  { %s634_s16 = scalar_lea.vmem %s40_s28, 2048  ;;  %p639_p4 = scmp.lt.s32.totalorder %s40_s28, %s40_s28 }
   0xb   :  { %p635_p3 = scmp.ne.s32.totalorder %s40_s28, %s634_s16  ;;  %p640_p5 = scmp.lt.s32.totalorder %s634_s16, %s634_s16 }
   0xd   :  { %p641_p6 = por %p640_p5, %p639_p4 }
   0xf   :  { %p642_p7 = pnand %p641_p6, %p635_p3 }
  0x11   :  { %645 = shalt.err (!%p642_p7)
}
  0x12   :  { %s720_s17 = smov 128   ;;  %s721_s18 = smov 8  }
  0x13   :  { %45 = dma.hbm_to_vmem [thread:$0]  %s887_s4, 2048, %s40_s28, [#allocation7], %s720_s17, %s720_s17, %s721_s18  }
  0x14   :  { %s646_s23 = scalar_lea.hbm %s885_s2, 2048 }
  0x15   :  { %p647_p8 = scmp.ne.s32.totalorder %s885_s2, %s646_s23  ;;  %p650_p9 = scmp.lt.u32.totalorder %s646_s23, %s885_s2 }
  0x17   :  { %p652_p10 = pnand %p650_p9, %p647_p8 }
  0x19   :  { %655 = shalt.err (!%p652_p10)
}
  0x1a   :  { %s656_s29 = scalar_lea.vmem %s773_s30, 2048  ;;  %p661_p12 = scmp.lt.s32.totalorder %s773_s30, %s773_s30 }
  0x1b   :  { %p657_p11 = scmp.ne.s32.totalorder %s773_s30, %s656_s29  ;;  %p662_p13 = scmp.lt.s32.totalorder %s656_s29, %s656_s29 }
  0x1d   :  { %p663_p0 = por %p662_p13, %p661_p12 }
  0x1f   :  { %p664_p1 = pnand %p663_p0, %p657_p11 }
  0x21   :  { %667 = shalt.err (!%p664_p1)
}
  0x22   :  { %31 = dma.hbm_to_vmem [thread:$0]  %s885_s2, 2048, %s773_s30, [#allocation4], %s720_s17, %s720_s17, %s721_s18  }
  0x23   :  { %s722_s9 = smov [#allocation8]   ;;  %s668_s13 = scalar_lea.hbm %s889_s6, 2048 }
  0x24   :  { %s53_s10 = sshll.u32 %s722_s9, 4  ;;  %p669_p2 = scmp.ne.s32.totalorder %s889_s6, %s668_s13  ;;  %s54_s10 = int_to_ptr.vmem [resolvable:$true] %s53_s10 }
  0x25   :  { %p672_p3 = scmp.lt.u32.totalorder %s668_s13, %s889_s6 }
  0x27   :  { %p674_p4 = pnand %p672_p3, %p669_p2 }
  0x29   :  { %677 = shalt.err (!%p674_p4)
}
  0x2a   :  { %s678_s20 = scalar_lea.vmem %s54_s10, 2048  ;;  %p683_p6 = scmp.lt.s32.totalorder %s54_s10, %s54_s10 }
  0x2b   :  { %p679_p5 = scmp.ne.s32.totalorder %s54_s10, %s678_s20  ;;  %p684_p7 = scmp.lt.s32.totalorder %s678_s20, %s678_s20 }
  0x2d   :  { %p685_p8 = por %p684_p7, %p683_p6 }
  0x2f   :  { %p686_p9 = pnand %p685_p8, %p679_p5 }
  0x31   :  { %689 = shalt.err (!%p686_p9)
}
  0x32   :  { %59 = dma.hbm_to_vmem [thread:$0]  %s889_s6, 2048, %s54_s10, [#allocation7], %s720_s17, %s720_s17, %s721_s18  }
  0x33   :  { %712 = dma.done.wait [#allocation4], 2048  }
  0x34   :  { %713 = vsyncadd [#allocation4], 4294965248 }
  0x35   :  { %714 = dma.done.wait [#allocation7], 4096  }
  0x36   :  { %715 = vsyncadd [#allocation7], 4294963200  ;;  %vm71_vm0 = vcmask 1047688   ;;  %v723_v0 = vmov 0.0|0.0   ;;  %v724_v1 = vmov 0.0   ;;  %vm725_vm1 = vmmov 0  }
  0x37   :  { %542 = vmatprep.subr.bf16.mxu0 %v723_v0  ;;  %72 = vst.msk [vmem:[#allocation2] sm:$0xff] %vm71_vm0, %v724_v1  ;;  %566 = vmatprep.subr.bf16.mxu1 %v723_v0  ;;  %v76_v2 = vld [vmem:[%s884_s1] sm:$0xff]  ;;  %v84_v3 = vld [vmem:[#allocation3] sm:$0xff]  ;;  %v85_v4 = vld [vmem:[#allocation3 + $0x8] sm:$0xff]  ;;  %s726_s18 = smov 16   ;;  %vm74_vm2 = vcmask 130048  }
  0x38   :  { %469 = vmatprep.mubr.msk.f32.mxu0 %vm725_vm1, %v724_v1  ;;  %504 = vmatprep.mubr.msk.f32.mxu1 %vm725_vm1, %v724_v1  ;;  %v543_v5 = vpack.c.bf16 %v85_v4, %v84_v3  ;;  %v86_v6 = vld [vmem:[#allocation3 + $0x10] sm:$0xff]  ;;  %v87_v7 = vld [vmem:[#allocation3 + $0x18] sm:$0xff]  ;;  %v88_v9 = vld [vmem:[#allocation3 + $0x20] sm:$0xff]  ;;  %vm81_vm3 = vcmask 138368   ;;  %s727_s26 = smov [#allocation9]   ;;  %vm365_vm4 = vcmask 64512  }
  0x39   :  { %78 = vrot.lane.b32.xlu0 %v76_v2, %s726_s18  ;;  %v546_v8 = vpack.c.bf16 %v87_v7, %v86_v6  ;;  %v89_v10 = vld [vmem:[#allocation3 + $0x28] sm:$0xff]  ;;  %v73_v11 = vld [vmem:[%s883_s0] sm:$0xff]  ;;  %v178_v12 = vld [vmem:[#allocation6] sm:$0xff]  ;;  %s373_s27 = sshll.u32 %s727_s26, 4  ;;  %s374_s27 = int_to_ptr.vmem [resolvable:$true] %s373_s27 }
  0x3a   :  { %544 = vmatpush3.bf16.msra.mxu0 %v543_v5  ;;  %75 = vst.msk [vmem:[#allocation2] sm:$0xff] %vm74_vm2, %v73_v11  ;;  %v179_v13 = vld [vmem:[#allocation6 + $0x8] sm:$0xff]  ;;  %v180_v14 = vld [vmem:[#allocation6 + $0x10] sm:$0xff]  ;;  %v549_v15 = vpack.c.bf16 %v89_v10, %v88_v9  ;;  %v181_v17 = vld [vmem:[#allocation6 + $0x18] sm:$0xff]  ;;  %s690_s29 = scalar_lea.vmem %s374_s27, 128  ;;  %p695_p11 = scmp.lt.s32.totalorder %s374_s27, %s374_s27 }
  0x3b   :  { %545 = vmatprep.subr.bf16.mxu0 %v723_v0  ;;  %v567_v16 = vpack.c.bf16 %v179_v13, %v178_v12  ;;  %v90_v18 = vld [vmem:[#allocation3 + $0x30] sm:$0xff]  ;;  %v91_v19 = vld [vmem:[#allocation3 + $0x38] sm:$0xff]  ;;  %v570_v20 = vpack.c.bf16 %v181_v17, %v180_v14  ;;  %v182_v21 = vld [vmem:[#allocation6 + $0x20] sm:$0xff]  ;;  %p691_p10 = scmp.ne.s32.totalorder %s374_s27, %s690_s29  ;;  %p696_p12 = scmp.lt.s32.totalorder %s690_s29, %s690_s29 }
  0x3c   :  { %v183_v22 = vld [vmem:[#allocation6 + $0x28] sm:$0xff]  ;;  %v552_v23 = vpack.c.bf16 %v91_v19, %v90_v18  ;;  %v92_v24 = vld [vmem:[#allocation3 + $0x40] sm:$0xff]  ;;  %v184_v27 = vld [vmem:[#allocation6 + $0x30] sm:$0xff] }
  0x3d   :  { %568 = vmatpush3.bf16.msra.mxu1 %v567_v16  ;;  %v93_v25 = vld [vmem:[#allocation3 + $0x48] sm:$0xff]  ;;  %v573_v26 = vpack.c.bf16 %v183_v22, %v182_v21  ;;  %v185_v28 = vld [vmem:[#allocation6 + $0x38] sm:$0xff]  ;;  %v94_v30 = vld [vmem:[#allocation3 + $0x50] sm:$0xff]  ;;  %p697_p13 = por %p696_p12, %p695_p11 }
  0x3e   :  { %547 = vmatpush3.bf16.msra.mxu0 %v546_v8  ;;  %569 = vmatprep.subr.bf16.mxu1 %v723_v0  ;;  %v555_v29 = vpack.c.bf16 %v93_v25, %v92_v24  ;;  %v95_v31 = vld [vmem:[#allocation3 + $0x58] sm:$0xff]  ;;  %v576_v32 = vpack.c.bf16 %v185_v28, %v184_v27  ;;  %v186_v33 = vld [vmem:[#allocation6 + $0x40] sm:$0xff]  ;;  %v187_v34 = vld [vmem:[#allocation6 + $0x48] sm:$0xff] }
  0x3f   :  { %548 = vmatprep.subr.bf16.mxu0 %v723_v0  ;;  %v558_v35 = vpack.c.bf16 %v95_v31, %v94_v30  ;;  %v96_v36 = vld [vmem:[#allocation3 + $0x60] sm:$0xff]  ;;  %v97_v37 = vld [vmem:[#allocation3 + $0x68] sm:$0xff]  ;;  %v579_v38 = vpack.c.bf16 %v187_v34, %v186_v33  ;;  %v188_v39 = vld [vmem:[#allocation6 + $0x50] sm:$0xff]  ;;  %p698_p0 = pnand %p697_p13, %p691_p10 }
  0x40   :  { %v189_v40 = vld [vmem:[#allocation6 + $0x58] sm:$0xff]  ;;  %v561_v41 = vpack.c.bf16 %v97_v37, %v96_v36  ;;  %v98_v42 = vld [vmem:[#allocation3 + $0x70] sm:$0xff]  ;;  %v190_v45 = vld [vmem:[#allocation6 + $0x60] sm:$0xff] }
  0x41   :  { %571 = vmatpush3.bf16.msra.mxu1 %v570_v20  ;;  %v99_v43 = vld [vmem:[#allocation3 + $0x78] sm:$0xff]  ;;  %v582_v44 = vpack.c.bf16 %v189_v40, %v188_v39  ;;  %v191_v46 = vld [vmem:[#allocation6 + $0x68] sm:$0xff]  ;;  %v192_v51 = vld [vmem:[#allocation6 + $0x70] sm:$0xff] }
  0x42   :  { %550 = vmatpush3.bf16.msra.mxu0 %v549_v15  ;;  %572 = vmatprep.subr.bf16.mxu1 %v723_v0  ;;  %v564_v47 = vpack.c.bf16 %v99_v43, %v98_v42  ;;  %v585_v48 = vpack.c.bf16 %v191_v46, %v190_v45  ;;  %v193_v52 = vld [vmem:[#allocation6 + $0x78] sm:$0xff]  ;;  %v272_v54 = vld [vmem:[#allocation8] sm:$0xff]  ;;  %v273_v55 = vld [vmem:[#allocation8 + $0x8] sm:$0xff] }
  0x43   :  { %551 = vmatprep.subr.bf16.mxu0 %v723_v0  ;;  %v588_v53 = vpack.c.bf16 %v193_v52, %v192_v51  ;;  %v274_v56 = vld [vmem:[#allocation8 + $0x10] sm:$0xff]  ;;  %v591_v57 = vpack.c.bf16 %v273_v55, %v272_v54  ;;  %v275_v58 = vld [vmem:[#allocation8 + $0x18] sm:$0xff]  ;;  %v276_v60 = vld [vmem:[#allocation8 + $0x20] sm:$0xff] }
  0x44   :  { %v594_v59 = vpack.c.bf16 %v275_v58, %v274_v56  ;;  %v277_v61 = vld [vmem:[#allocation8 + $0x28] sm:$0xff]  ;;  %v278_v63 = vld [vmem:[#allocation8 + $0x30] sm:$0xff]  ;;  %v280_v3 = vld [vmem:[#allocation8 + $0x40] sm:$0xff] }
  0x45   :  { %574 = vmatpush3.bf16.msra.mxu1 %v573_v26  ;;  %v597_v62 = vpack.c.bf16 %v277_v61, %v276_v60  ;;  %v281_v4 = vld [vmem:[#allocation8 + $0x48] sm:$0xff]  ;;  %v282_v6 = vld [vmem:[#allocation8 + $0x50] sm:$0xff]  ;;  %v283_v7 = vld [vmem:[#allocation8 + $0x58] sm:$0xff] }
  0x46   :  { %553 = vmatpush3.bf16.msra.mxu0 %v552_v23  ;;  %575 = vmatprep.subr.bf16.mxu1 %v723_v0  ;;  %v603_v5 = vpack.c.bf16 %v281_v4, %v280_v3  ;;  %v606_v8 = vpack.c.bf16 %v283_v7, %v282_v6  ;;  %v284_v9 = vld [vmem:[#allocation8 + $0x60] sm:$0xff]  ;;  %v285_v10 = vld [vmem:[#allocation8 + $0x68] sm:$0xff]  ;;  %v383_v12 = vld [vmem:[%s886_s3] ss:$0 sm:$0xff] }
  0x47   :  { %554 = vmatprep.subr.bf16.mxu0 %v723_v0  ;;  %v609_v11 = vpack.c.bf16 %v285_v10, %v284_v9  ;;  %v286_v17 = vld [vmem:[#allocation8 + $0x70] sm:$0xff]  ;;  %v287_v18 = vld [vmem:[#allocation8 + $0x78] sm:$0xff] }
  0x48   :  { %v612_v19 = vpack.c.bf16 %v287_v18, %v286_v17  ;;  %v384_v20 = vld [vmem:[%s888_s5] ss:$0 sm:$0xff] }
  0x49   :  { %577 = vmatpush3.bf16.msra.mxu1 %v576_v32  ;;  %v385_v24 = vld [vmem:[%s890_s7] ss:$0 sm:$0xff] }
  0x4a   :  { %556 = vmatpush3.bf16.msra.mxu0 %v555_v29  ;;  %578 = vmatprep.subr.bf16.mxu1 %v723_v0 }
  0x4b   :  { %557 = vmatprep.subr.bf16.mxu0 %v723_v0 }
  0x4d   :  { %580 = vmatpush3.bf16.msra.mxu1 %v579_v38 }
  0x4e   :  { %559 = vmatpush3.bf16.msra.mxu0 %v558_v35  ;;  %581 = vmatprep.subr.bf16.mxu1 %v723_v0 }
  0x4f   :  { %560 = vmatprep.subr.bf16.mxu0 %v723_v0 }
  0x51   :  { %583 = vmatpush3.bf16.msra.mxu1 %v582_v44 }
  0x52   :  { %562 = vmatpush3.bf16.msra.mxu0 %v561_v41  ;;  %584 = vmatprep.subr.bf16.mxu1 %v723_v0 }
  0x53   :  { %563 = vmatprep.subr.bf16.mxu0 %v723_v0 }
  0x55   :  { %586 = vmatpush3.bf16.msra.mxu1 %v585_v48 }
  0x56   :  { %565 = vmatpush3.bf16.msra.mxu0 %v564_v47  ;;  %587 = vmatprep.subr.bf16.mxu1 %v723_v0 }
  0x57   :  { %590 = vmatprep.subr.bf16.mxu0 %v723_v0 }
  0x59   :  { %589 = vmatpush3.bf16.msra.mxu1 %v588_v53 }
  0xab   :  { %v79_v49 = vpop.permute.xlu0 %78 }
  0xac   :  { %82 = vst.msk [vmem:[#allocation2] sm:$0xff] %vm81_vm3, %v79_v49 }
  0xb3   :  { %v83_v50 = vld [vmem:[#allocation2] sm:$0xff] }
  0xb4   :  { %470 = vmatmul.mubr.f32.vlgmr.msra.gmra.mrb[0].mxu0 %v83_v50 }
  0xb5   :  { %539 = vmatprep.mubr.msk.f32.mxu0 %vm725_vm1, %v724_v1  ;;  %592 = vmatpush3.bf16.msra.mxu0 %v591_v57  ;;  %v279_v1 = vld [vmem:[#allocation8 + $0x38] sm:$0xff] }
  0xb6   :  { %593 = vmatprep.subr.bf16.mxu0 %v723_v0  ;;  %v600_v2 = vpack.c.bf16 %v279_v1, %v278_v63 }
  0xb9   :  { %595 = vmatpush3.bf16.msra.mxu0 %v594_v59 }
  0xba   :  { %596 = vmatprep.subr.bf16.mxu0 %v723_v0 }
  0xbd   :  { %598 = vmatpush3.bf16.msra.mxu0 %v597_v62 }
  0xbe   :  { %599 = vmatprep.subr.bf16.mxu0 %v723_v0 }
  0xc1   :  { %601 = vmatpush3.bf16.msra.mxu0 %v600_v2 }
  0xc2   :  { %602 = vmatprep.subr.bf16.mxu0 %v723_v0 }
  0xc5   :  { %604 = vmatpush3.bf16.msra.mxu0 %v603_v5 }
  0xc6   :  { %605 = vmatprep.subr.bf16.mxu0 %v723_v0 }
  0xc9   :  { %607 = vmatpush3.bf16.msra.mxu0 %v606_v8 }
  0xca   :  { %608 = vmatprep.subr.bf16.mxu0 %v723_v0 }
  0xcd   :  { %610 = vmatpush3.bf16.msra.mxu0 %v609_v11 }
  0xce   :  { %611 = vmatprep.subr.bf16.mxu0 %v723_v0 }
  0xd1   :  { %613 = vmatpush3.bf16.msra.mxu0 %v612_v19 }
 0x187   :  { %v173_v13 = vpop.f32.mrb[0].mxu0 }
 0x188   :  { %v174_v14 = vadd.f32 %v383_v12, %v173_v13  ;;  %v471_v15 = vpop.f32.mrb[1].mxu0 }
 0x18a   :  { %v177_v16 = vmax.f32 %v174_v14, 0.0 }
 0x18c   :  { %505 = vmatmul.mubr.f32.vlgmr.msra.gmra.mrb[0].mxu1 %v177_v16 }
 0x25f   :  { %v267_v21 = vpop.f32.mrb[0].mxu1 }
 0x260   :  { %v268_v22 = vadd.f32 %v384_v20, %v267_v21  ;;  %v506_v0 = vpop.f32.mrb[1].mxu1 }
 0x262   :  { %v271_v23 = vmax.f32 %v268_v22, 0.0 }
 0x264   :  { %540 = vmatmul.mubr.f32.vlgmr.msra.gmra.mrb[2].mxu0 %v271_v23 }
 0x337   :  { %v361_v25 = vpop.f32.mrb[2].mxu0 }
 0x338   :  { %v362_v26 = vadd.f32 %v385_v24, %v361_v25  ;;  %v541_v27 = vpop.f32.mrb[3].mxu0 }
 0x33a   :  { %366 = vst.msk [vmem:[#allocation9] sm:$0xff] %vm365_vm4, %v362_v26 }
 0x33b   :  { %701 = shalt.err (!%p698_p0)
}
 0x33c   :  { %s702_s28 = scalar_lea.hbm %s891_s8, 128 }
 0x33d   :  { %p703_p1 = scmp.ne.s32.totalorder %s891_s8, %s702_s28  ;;  %p706_p2 = scmp.lt.u32.totalorder %s702_s28, %s891_s8 }
 0x33f   :  { %p708_p3 = pnand %p706_p2, %p703_p1 }
 0x341   :  { %711 = shalt.err (!%p708_p3)
}
 0x342   :  { %376 = dma.vmem_to_hbm [thread:$0]  %s374_s27, 128, %s891_s8, [#allocation5]  }
 0x343   :  { %716 = dma.done.wait [#allocation5], 128  }
 0x344   :  { %717 = vsyncadd [#allocation5], 4294967168 }
 0x345   :  { %380 = vsyncpa [#allocation4], 1 }
 0x346   :  { %381 = vsyncpa [#allocation7], 1 }
 0x347   :  { %382 = vsyncpa [#allocation5], 1 }

</bundles_post_ra>
